<compile_context>
chip_gen: v6e
topology: v6e:2x2x1
jax: 0.10.0
libtpu: 0.0.40
codegen_flags: <defaults>
</compile_context>

<pallas_src>
import functools

import jax
import jax.numpy as jnp
from jax.experimental import pallas as pl
from jax.experimental.pallas import tpu as pltpu

EPS = 1e-5
NEG_PAD = -1e30          # value that maps to exactly 0 after fused BN+ReLU
VMEM_LIMIT = 48 * 1024 * 1024


# ---------------------------------------------------------------------------
# Small helpers
# ---------------------------------------------------------------------------
def _round_up(x, m):
    return ((x + m - 1) // m) * m


def _pick_tm(M, K, N, budget_bytes=20 * 1024 * 1024, tm_max=2048):
    """Largest row tile (multiple of 8, <= tm_max) whose double-buffered bf16
    input block + output block fit comfortably in the VMEM budget."""
    per_row = 2 * 2 * (K + N)                       # 2 buffers * bf16 * (in+out)
    tm = min(tm_max, max(8, budget_bytes // max(per_row, 1)))
    tm = min(tm, _round_up(M, 8))
    return max(8, (tm // 8) * 8)


# ---------------------------------------------------------------------------
# Kernels
# ---------------------------------------------------------------------------
def convtranspose_matmul_kernel(x_ref, w_ref, b_ref, o_ref):
    # x: (tm, Cin) bf16, w: (Cin, Co*4) bf16, b: (1, Co*4) f32, o: (tm, Co*4) bf16
    acc = jnp.dot(x_ref[...], w_ref[...], preferred_element_type=jnp.float32)
    o_ref[...] = (acc + b_ref[...]).astype(o_ref.dtype)


def conv_stats_kernel(taps_ref, w_ref, scale_ref, shift_ref,
                      y_ref, sum_ref, sqsum_ref,
                      acc_sum, acc_sq, *, apply_input_act):
    # taps_ref : (tm, 9*Cin) bf16   -- im2col rows of the 3x3 conv
    # w_ref    : (9*Cin, Cout) bf16 -- packed conv weights (bias dropped: no-op
    #                                  under training-mode BN)
    # scale/shift_ref : (1, 9*Cin) f32 -- previous stage's BN affine, tiled per
    #                                     tap (only used when apply_input_act)
    # y_ref    : (tm, Cout) bf16    -- pre-BN conv output
    # sum/sqsum_ref : (1, Cout) f32 -- batch stats, written on the last step
    t = taps_ref[...]
    if apply_input_act:
        # Fused previous-stage BN + ReLU on the tap reads (f32 on the VPU,
        # bf16 back onto the MXU).  Spatial/row padding was filled with a
        # large negative value so ReLU maps it to exactly 0.
        t32 = t.astype(jnp.float32) * scale_ref[...] + shift_ref[...]
        t = jnp.maximum(t32, 0.0).astype(taps_ref.dtype)

    y = jnp.dot(t, w_ref[...], preferred_element_type=jnp.float32)
    y_ref[...] = y.astype(y_ref.dtype)

    @pl.when(pl.program_id(0) == 0)
    def _():
        acc_sum[...] = jnp.zeros_like(acc_sum)
        acc_sq[...] = jnp.zeros_like(acc_sq)

    acc_sum[...] += jnp.sum(y, axis=0, keepdims=True)
    acc_sq[...] += jnp.sum(y * y, axis=0, keepdims=True)

    @pl.when(pl.program_id(0) == pl.num_programs(0) - 1)
    def _():
        sum_ref[...] = acc_sum[...]
        sqsum_ref[...] = acc_sq[...]


def bn_relu_kernel(y_ref, scale_ref, shift_ref, o_ref):
    # y_ref: (tm, C) bf16, scale/shift: (1, C) f32, o_ref: (tm, C) f32
    y = y_ref[...].astype(jnp.float32)
    o_ref[...] = jnp.maximum(y * scale_ref[...] + shift_ref[...], 0.0)


# ---------------------------------------------------------------------------
# Pallas wrappers
# ---------------------------------------------------------------------------
def pallas_convtranspose_matmul(x, w, b, tm):
    M, Cin = x.shape
    Nc = w.shape[1]
    Mp = _round_up(M, tm)
    if Mp != M:
        x = jnp.pad(x, ((0, Mp - M), (0, 0)))
    out = pl.pallas_call(
        convtranspose_matmul_kernel,
        out_shape=jax.ShapeDtypeStruct((Mp, Nc), jnp.bfloat16),
        grid=(Mp // tm,),
        in_specs=[
            pl.BlockSpec((tm, Cin), lambda i: (i, 0)),
            pl.BlockSpec((Cin, Nc), lambda i: (0, 0)),
            pl.BlockSpec((1, Nc), lambda i: (0, 0)),
        ],
        out_specs=pl.BlockSpec((tm, Nc), lambda i: (i, 0)),
        compiler_params=pltpu.CompilerParams(
            dimension_semantics=("parallel",),
            vmem_limit_bytes=VMEM_LIMIT),
    )(x, w, b.reshape(1, Nc).astype(jnp.float32))
    return out[:M]


def pallas_conv3x3_stats(taps, w_packed, scale_t, shift_t, apply_input_act, tm):
    Mp, K = taps.shape
    Cout = w_packed.shape[1]
    kern = functools.partial(conv_stats_kernel, apply_input_act=apply_input_act)
    y, s, sq = pl.pallas_call(
        kern,
        out_shape=(
            jax.ShapeDtypeStruct((Mp, Cout), jnp.bfloat16),
            jax.ShapeDtypeStruct((1, Cout), jnp.float32),
            jax.ShapeDtypeStruct((1, Cout), jnp.float32),
        ),
        grid=(Mp // tm,),
        in_specs=[
            pl.BlockSpec((tm, K), lambda i: (i, 0)),
            pl.BlockSpec((K, Cout), lambda i: (0, 0)),   # constant index_map -> resident
            pl.BlockSpec((1, K), lambda i: (0, 0)),
            pl.BlockSpec((1, K), lambda i: (0, 0)),
        ],
        out_specs=(
            pl.BlockSpec((tm, Cout), lambda i: (i, 0)),
            pl.BlockSpec((1, Cout), lambda i: (0, 0)),
            pl.BlockSpec((1, Cout), lambda i: (0, 0)),
        ),
        scratch_shapes=[pltpu.VMEM((1, Cout), jnp.float32),
                        pltpu.VMEM((1, Cout), jnp.float32)],
        compiler_params=pltpu.CompilerParams(
            # Stats are accumulated serially across the row-tile axis.
            dimension_semantics=("arbitrary",),
            vmem_limit_bytes=VMEM_LIMIT),
    )(taps, w_packed, scale_t, shift_t)
    return y, s, sq


def pallas_bn_relu(y, scale, shift, tm):
    Mp, C = y.shape
    return pl.pallas_call(
        bn_relu_kernel,
        out_shape=jax.ShapeDtypeStruct((Mp, C), jnp.float32),
        grid=(Mp // tm,),
        in_specs=[
            pl.BlockSpec((tm, C), lambda i: (i, 0)),
            pl.BlockSpec((1, C), lambda i: (0, 0)),
            pl.BlockSpec((1, C), lambda i: (0, 0)),
        ],
        out_specs=pl.BlockSpec((tm, C), lambda i: (i, 0)),
        compiler_params=pltpu.CompilerParams(
            dimension_semantics=("parallel",),
            vmem_limit_bytes=VMEM_LIMIT),
    )(y, scale.reshape(1, C).astype(jnp.float32),
      shift.reshape(1, C).astype(jnp.float32))


# ---------------------------------------------------------------------------
# Glue (pure-JAX reshapes / padding / parameter plumbing)
# ---------------------------------------------------------------------------
def im2col_3x3(x_nhwc, pad_value):
    """(N,H,W,C) -> (N*H*W, 9*C) im2col for a 3x3 conv with padding=1.
    Columns ordered (ky, kx) major, channel minor (matches packed weights)."""
    N, H, W, C = x_nhwc.shape
    xp = jnp.pad(x_nhwc, ((0, 0), (1, 1), (1, 1), (0, 0)),
                 constant_values=pad_value)
    taps = [xp[:, ky:ky + H, kx:kx + W, :].reshape(N * H * W, C)
            for ky in range(3) for kx in range(3)]
    return jnp.concatenate(taps, axis=-1)


def conv_bn_stats_stage(x_nhwc, w_oihw, gamma, beta, *, in_scale=None,
                        in_shift=None):
    """3x3 conv (pad=1, bias dropped — exactly cancelled by training BN) plus
    batch statistics.  If in_scale/in_shift are given, the previous stage's
    BN+ReLU is fused into the tap reads inside the kernel."""
    N, H, W, Cin = x_nhwc.shape
    Cout = w_oihw.shape[0]
    M = N * H * W
    K = 9 * Cin
    apply_act = in_scale is not None
    # When BN+ReLU is fused in-kernel, spatial/row padding must map to exactly
    # 0 AFTER relu(x*scale+shift); a huge negative pad value guarantees that.
    pad_val = NEG_PAD if apply_act else 0.0

    taps = im2col_3x3(x_nhwc, pad_val)                       # (M, 9*Cin) bf16
    tm = _pick_tm(M, K, Cout)
    Mp = _round_up(M, tm)
    if Mp != M:
        taps = jnp.pad(taps, ((0, Mp - M), (0, 0)), constant_values=pad_val)

    w_packed = jnp.transpose(w_oihw, (2, 3, 1, 0)).reshape(K, Cout)
    w_packed = w_packed.astype(jnp.bfloat16)

    if apply_act:
        scale_t = jnp.tile(in_scale, 9).reshape(1, K).astype(jnp.float32)
        shift_t = jnp.tile(in_shift, 9).reshape(1, K).astype(jnp.float32)
    else:
        scale_t = jnp.ones((1, K), jnp.float32)
        shift_t = jnp.zeros((1, K), jnp.float32)

    y, s, sq = pallas_conv3x3_stats(taps, w_packed, scale_t, shift_t,
                                    apply_act, tm)
    mean = s[0] / M
    var = sq[0] / M - mean * mean                 # biased variance (training BN)
    bn_scale = gamma * jax.lax.rsqrt(var + EPS)
    bn_shift = beta - mean * bn_scale
    return y, M, (N, H, W, Cout), bn_scale, bn_shift, tm


def up_forward(params, x1_nchw, x2_nchw):
    """Equivalent of Up.forward(x1, x2). Inputs/outputs are NCHW like PyTorch."""
    x1 = jnp.transpose(x1_nchw, (0, 2, 3, 1)).astype(jnp.bfloat16)  # NHWC
    x2 = jnp.transpose(x2_nchw, (0, 2, 3, 1)).astype(jnp.bfloat16)  # NHWC

    # --- ConvTranspose2d(in, in//2, kernel=2, stride=2) as a tiled matmul ---
    N, h, w, Cin = x1.shape
    w_up = params["w_up"]                         # (Cin, Co, 2, 2) PyTorch layout
    Co = w_up.shape[1]
    w_up_flat = w_up.reshape(Cin, Co * 4).astype(jnp.bfloat16)  # cols (co, ky, kx)
    b_up_flat = jnp.repeat(params["b_up"], 4)
    M1 = N * h * w
    tm_up = _pick_tm(M1, Cin, Co * 4)
    out_flat = pallas_convtranspose_matmul(x1.reshape(M1, Cin), w_up_flat,
                                           b_up_flat, tm_up)     # (M1, Co*4)
    x1u = out_flat.reshape(N, h, w, Co, 2, 2)
    x1u = jnp.transpose(x1u, (0, 1, 4, 2, 5, 3)).reshape(N, 2 * h, 2 * w, Co)

    # --- F.pad(x1, [dX//2, dX-dX//2, dY//2, dY-dY//2]) ---
    diffY = x2.shape[1] - x1u.shape[1]
    diffX = x2.shape[2] - x1u.shape[2]
    x1u = jnp.pad(x1u, ((0, 0),
                        (diffY // 2, diffY - diffY // 2),
                        (diffX // 2, diffX - diffX // 2),
                        (0, 0)))

    # --- torch.cat([x2, x1], dim=1)  (channel concat, NHWC -> axis=-1) ---
    # (pixel-shuffle / pad / concat / im2col remain XLA glue and fuse into the
    #  tap-construction copy feeding the stage-1 conv.)
    x = jnp.concatenate([x2, x1u], axis=-1)

    # --- DoubleConv: conv1 (+stats), conv2 (+fused BN1/ReLU1, +stats), BN2/ReLU2
    y1, M, dims1, sc1, sh1, _ = conv_bn_stats_stage(
        x, params["w1"], params["g1"], params["be1"])
    N1, H1, W1, Cmid = dims1
    y1_img = y1[:M].reshape(N1, H1, W1, Cmid)

    y2, M2, dims2, sc2, sh2, tm2 = conv_bn_stats_stage(
        y1_img, params["w2"], params["g2"], params["be2"],
        in_scale=sc1, in_shift=sh1)

    z2 = pallas_bn_relu(y2, sc2, sh2, tm2)[:M2]
    N2, H2, W2, Cout = dims2
    out = z2.reshape(N2, H2, W2, Cout)
    return jnp.transpose(out, (0, 3, 1, 2))       # back to NCHW, f32


def init_params(key, in_channels, out_channels):
    co = in_channels // 2
    mid = out_channels
    ks = jax.random.split(key, 6)
    p = {
        # ConvTranspose2d weight layout: (in, out, kH, kW)
        "w_up": 0.1 * jax.random.normal(ks[0], (in_channels, co, 2, 2), jnp.float32),
        "b_up": 0.1 * jax.random.normal(ks[1], (co,), jnp.float32),
        # Conv2d weight layout: (out, in, kH, kW).  NOTE: conv biases b1/b2 are
        # kept for spec fidelity but are NOT used — a per-channel constant added
        # before training-mode BatchNorm is exactly cancelled by the mean
        # subtraction, so dropping it is bit-exact and saves work.
        "w1": 0.1 * jax.random.normal(ks[2], (mid, in_channels, 3, 3), jnp.float32),
        "b1": 0.1 * jax.random.normal(ks[3], (mid,), jnp.float32),
        "g1": jnp.ones((mid,), jnp.float32),
        "be1": jnp.zeros((mid,), jnp.float32),
        "w2": 0.1 * jax.random.normal(ks[4], (out_channels, mid, 3, 3), jnp.float32),
        "b2": 0.1 * jax.random.normal(ks[5], (out_channels,), jnp.float32),
        "g2": jnp.ones((out_channels,), jnp.float32),
        "be2": jnp.zeros((out_channels,), jnp.float32),
    }
    return p


if __name__ == "__main__":
    key = jax.random.PRNGKey(0)
    k_params, k1, k2 = jax.random.split(key, 3)

    in_channels, out_channels = 8, 4
    # x1: coarse feature map (to be upsampled 2x), x2: skip connection
    x1 = jax.random.normal(k1, (2, in_channels, 8, 8), jnp.float32)         # NCHW
    x2 = jax.random.normal(k2, (2, in_channels // 2, 16, 16), jnp.float32)  # NCHW

    params = init_params(k_params, in_channels, out_channels)

    out = up_forward(params, x1, x2)
    out = jax.block_until_ready(out)
    assert out.shape == (2, out_channels, 16, 16), out.shape
    assert jnp.all(jnp.isfinite(out))
    print("KERNEL_OK")
</pallas_src>

<mosaic_0001>
module attributes {stable_mosaic.version = 11 : i64} {
  func.func @convtranspose_matmul_kernel(%arg0: i32, %arg1: memref<128x8xbf16, #tpu.memory_space<vmem>>, %arg2: memref<8x16xbf16, #tpu.memory_space<vmem>>, %arg3: memref<1x16xf32, #tpu.memory_space<vmem>>, %arg4: memref<128x16xbf16, #tpu.memory_space<vmem>>) attributes {dimension_semantics = [#tpu.dimension_semantics<parallel>], iteration_bounds = array<i64: 1>, scalar_prefetch = 0 : i64, scratch_operands = 0 : i64, tpu.core_type = #tpu.core_type<tc>, window_params = [{transform_indices = @transform_0, window_bounds = array<i64: 128, 8>}, {pipeline_mode = #tpu.pipeline_mode<synchronous>, transform_indices = @transform_1, window_bounds = array<i64: 8, 16>}, {pipeline_mode = #tpu.pipeline_mode<synchronous>, transform_indices = @transform_2, window_bounds = array<i64: 1, 16>}, {transform_indices = @transform_3, window_bounds = array<i64: 128, 16>}]} {
    %c0 = arith.constant 0 : index
    %c0_0 = arith.constant 0 : index
    %0 = vector.load %arg1[%c0, %c0_0] : memref<128x8xbf16, #tpu.memory_space<vmem>>, vector<128x8xbf16>
    %c0_1 = arith.constant 0 : index
    %c0_2 = arith.constant 0 : index
    %1 = vector.load %arg2[%c0_1, %c0_2] : memref<8x16xbf16, #tpu.memory_space<vmem>>, vector<8x16xbf16>
    %cst = arith.constant dense<0.000000e+00> : vector<128x16xf32>
    %2 = tpu.matmul %0, %1, %cst {dimension_numbers = #tpu.dot_dimension_numbers<[1], [0], [0], [1], [0, 0, 1, 1], [], []>} : vector<128x8xbf16>, vector<8x16xbf16>, vector<128x16xf32> -> vector<128x16xf32>
    %c0_3 = arith.constant 0 : index
    %c0_4 = arith.constant 0 : index
    %3 = vector.load %arg3[%c0_3, %c0_4] : memref<1x16xf32, #tpu.memory_space<vmem>>, vector<1x16xf32>
    %4 = vector.broadcast %3 : vector<1x16xf32> to vector<128x16xf32>
    %5 = arith.addf %2, %4 : vector<128x16xf32>
    %6 = arith.truncf %5 : vector<128x16xf32> to vector<128x16xbf16>
    %c0_5 = arith.constant 0 : index
    %c0_6 = arith.constant 0 : index
    %7 = vector.load %arg4[%c0_5, %c0_6] : memref<128x16xbf16, #tpu.memory_space<vmem>>, vector<128x16xbf16>
    tpu.vector_store %arg4[%c0_5, %c0_6], %6 {strides = array<i32>} : memref<128x16xbf16, #tpu.memory_space<vmem>>, vector<128x16xbf16>,
    return
  }
  func.func @transform_0(%arg0: i32) -> (i32, i32) {
    %c0_i32 = arith.constant 0 : i32
    %c0_i32_0 = arith.constant 0 : i32
    return %arg0, %c0_i32 : i32, i32
  }
  func.func @transform_1(%arg0: i32) -> (i32, i32) {
    %c0_i32 = arith.constant 0 : i32
    %c0_i32_0 = arith.constant 0 : i32
    %c0_i32_1 = arith.constant 0 : i32
    return %c0_i32, %c0_i32_0 : i32, i32
  }
  func.func @transform_2(%arg0: i32) -> (i32, i32) {
    %c0_i32 = arith.constant 0 : i32
    %c0_i32_0 = arith.constant 0 : i32
    %c0_i32_1 = arith.constant 0 : i32
    return %c0_i32, %c0_i32_0 : i32, i32
  }
  func.func @transform_3(%arg0: i32) -> (i32, i32) {
    %c0_i32 = arith.constant 0 : i32
    %c0_i32_0 = arith.constant 0 : i32
    return %arg0, %c0_i32 : i32, i32
  }
}

</mosaic_0001>

<bundles_post_ra>
// kernel: tpu_custom_call.1
= control target key start
LH: loop header
LB: loop body
LE: loop exit
PB: predicated region body
PF: predicated region fallthrough
CT: control target
= control target key end

     0   :  { %vm104_vm0 = vcmask 1043456   ;;  %vm79_vm1 = vcmask 64512   ;;  %vm269_vm2 = vcmask 125952   ;;  %s500_s1 = inlined_call_operand.vmem [shape: bf16[8,16], index: 1, kind: input, shape index: {}]   ;;  %s501_s0 = inlined_call_operand.vmem [shape: bf16[128,8], index: 0, kind: input, shape index: {}]   ;;  %s502_s2 = inlined_call_operand.vmem [shape: f32[1,16], index: 2, kind: input, shape index: {}]   ;;  %s503_s3 = inlined_call_operand.vmem [shape: bf16[128,16], index: 3, kind: output, shape index: {}]  }
   0x1   :  { %v31_v0 = vld [vmem:[%s500_s1] sm:$0xf]  ;;  %v372_v4 = vld [vmem:[%s501_s0 + $0x8] sm:$0xff]   ;;  %v374_v6 = vld [vmem:[%s501_s0 + $0x10] sm:$0xff]  }
   0x2   :  { %368 = vmatprep.subr.msk.bf16.mxu0 %vm104_vm0, %v31_v0  ;;  %369 = vmatprep.subr.msk.bf16.mxu1 %vm104_vm0, %v31_v0  ;;  %v106_v1 = vsel %vm104_vm0, %v31_v0, 0  ;;  %v370_v2 = vld [vmem:[%s501_s0] sm:$0xff]   ;;  %v373_v5 = vld [vmem:[%s501_s0 + $0x28] sm:$0xff]   ;;  %v375_v7 = vld [vmem:[%s501_s0 + $0x30] sm:$0xff]  }
   0x3   :  { %349 = vmatpush3.bf16.msra.mxu0 %v106_v1  ;;  %367 = vmatpush3.bf16.msra.mxu1 %v106_v1  ;;  %v371_v3 = vld [vmem:[%s501_s0 + $0x20] sm:$0xff]   ;;  %v376_v8 = vld [vmem:[%s501_s0 + $0x18] sm:$0xff]  }
   0x4   :  { %350 = vmatprep.mubr.msk.bf16.mxu0 %vm79_vm1, %v370_v2  ;;  %358 = vmatprep.mubr.msk.bf16.mxu1 %vm79_vm1, %v371_v3  ;;  %v377_v9 = vld [vmem:[%s501_s0 + $0x38] sm:$0xff]   ;;  %v290_v10 = vld [vmem:[%s502_s2] ss:$0 sm:$0xff] }
   0x6   :  { %351 = vmatmul.mubr.msk.bf16.vlgmr.msra.gmra.mxu0 %vm79_vm1, %v372_v4  ;;  %359 = vmatmul.mubr.msk.bf16.vlgmr.msra.gmra.mxu1 %vm79_vm1, %v373_v5 }
   0x7   :  { %354 = vmatprep.mubr.msk.bf16.mxu0 %vm79_vm1, %v374_v6  ;;  %362 = vmatprep.mubr.msk.bf16.mxu1 %vm79_vm1, %v375_v7 }
   0xe   :  { %355 = vmatmul.mubr.msk.bf16.gmra.mxu0 %vm79_vm1, %v376_v8  ;;  %363 = vmatmul.mubr.msk.bf16.gmra.mxu1 %vm79_vm1, %v377_v9 }
  0xc6   :  { %v352_v11 = vpop.f32.mrf.mxu0  ;;  %v360_v13 = vpop.f32.mrf.mxu1 }
  0xc7   :  { %v151_v12 = vadd.f32 %v352_v11, %v290_v10  ;;  %v183_v14 = vadd.f32 %v360_v13, %v290_v10 }
  0xc8   :  { %v142_v15 = vpop.f32.mrf.mxu0  ;;  %v174_v18 = vpop.f32.mrf.mxu1 }
  0xc9   :  { %v325_v16 = vpack.c.bf16 %v151_v12, %v151_v12  ;;  %v143_v17 = vadd.f32 %v290_v10, %v142_v15  ;;  %v333_v19 = vpack.c.bf16 %v183_v14, %v183_v14  ;;  %v175_v20 = vadd.f32 %v290_v10, %v174_v18 }
  0xca   :  { %v353_v21 = vpop.f32.mrf.mxu0  ;;  %v361_v24 = vpop.f32.mrf.mxu1 }
  0xcb   :  { %272 = vst.msk [vmem:[%s503_s3 + $0x8] sm:$0xf] %vm269_vm2, %v325_v16  ;;  %v323_v22 = vpack.c.bf16 %v143_v17, %v143_v17  ;;  %v154_v23 = vadd.f32 %v353_v21, %v290_v10  ;;  %280 = vst.msk [vmem:[%s503_s3 + $0x28] sm:$0xf] %vm269_vm2, %v333_v19  ;;  %v331_v25 = vpack.c.bf16 %v175_v20, %v175_v20 }
  0xcc   :  { %v186_v26 = vadd.f32 %v361_v24, %v290_v10  ;;  %v145_v27 = vpop.f32.mrf.mxu0  ;;  %v177_v30 = vpop.f32.mrf.mxu1 }
  0xcd   :  { %270 = vst.msk [vmem:[%s503_s3] sm:$0xf] %vm269_vm2, %v323_v22  ;;  %v326_v28 = vpack.c.bf16 %v154_v23, %v154_v23  ;;  %v146_v29 = vadd.f32 %v290_v10, %v145_v27  ;;  %278 = vst.msk [vmem:[%s503_s3 + $0x20] sm:$0xf] %vm269_vm2, %v331_v25  ;;  %v178_v32 = vadd.f32 %v290_v10, %v177_v30 }
  0xce   :  { %v334_v31 = vpack.c.bf16 %v186_v26, %v186_v26  ;;  %v356_v33 = vpop.f32.mrf.mxu0  ;;  %v364_v36 = vpop.f32.mrf.mxu1 }
  0xcf   :  { %273 = vst.msk [vmem:[%s503_s3 + $0xc] sm:$0xf] %vm269_vm2, %v326_v28  ;;  %v324_v34 = vpack.c.bf16 %v146_v29, %v146_v29  ;;  %v167_v35 = vadd.f32 %v356_v33, %v290_v10  ;;  %v332_v37 = vpack.c.bf16 %v178_v32, %v178_v32  ;;  %v199_v38 = vadd.f32 %v364_v36, %v290_v10 }
  0xd0   :  { %281 = vst.msk [vmem:[%s503_s3 + $0x2c] sm:$0xf] %vm269_vm2, %v334_v31  ;;  %v158_v39 = vpop.f32.mrf.mxu0  ;;  %v190_v42 = vpop.f32.mrf.mxu1 }
  0xd1   :  { %271 = vst.msk [vmem:[%s503_s3 + $0x4] sm:$0xf] %vm269_vm2, %v324_v34  ;;  %v329_v40 = vpack.c.bf16 %v167_v35, %v167_v35  ;;  %v159_v41 = vadd.f32 %v290_v10, %v158_v39  ;;  %279 = vst.msk [vmem:[%s503_s3 + $0x24] sm:$0xf] %vm269_vm2, %v332_v37  ;;  %v337_v43 = vpack.c.bf16 %v199_v38, %v199_v38 }
  0xd2   :  { %v191_v44 = vadd.f32 %v290_v10, %v190_v42  ;;  %v357_v45 = vpop.f32.mrf.mxu0  ;;  %v365_v48 = vpop.f32.mrf.mxu1 }
  0xd3   :  { %276 = vst.msk [vmem:[%s503_s3 + $0x18] sm:$0xf] %vm269_vm2, %v329_v40  ;;  %v327_v46 = vpack.c.bf16 %v159_v41, %v159_v41  ;;  %v170_v47 = vadd.f32 %v357_v45, %v290_v10  ;;  %284 = vst.msk [vmem:[%s503_s3 + $0x38] sm:$0xf] %vm269_vm2, %v337_v43  ;;  %v202_v50 = vadd.f32 %v365_v48, %v290_v10 }
  0xd4   :  { %v335_v49 = vpack.c.bf16 %v191_v44, %v191_v44  ;;  %v161_v51 = vpop.f32.mrf.mxu0  ;;  %v193_v54 = vpop.f32.mrf.mxu1 }
  0xd5   :  { %274 = vst.msk [vmem:[%s503_s3 + $0x10] sm:$0xf] %vm269_vm2, %v327_v46  ;;  %v330_v52 = vpack.c.bf16 %v170_v47, %v170_v47  ;;  %v162_v53 = vadd.f32 %v290_v10, %v161_v51  ;;  %v338_v55 = vpack.c.bf16 %v202_v50, %v202_v50  ;;  %v194_v56 = vadd.f32 %v290_v10, %v193_v54 }
  0xd6   :  { %282 = vst.msk [vmem:[%s503_s3 + $0x30] sm:$0xf] %vm269_vm2, %v335_v49 }
  0xd7   :  { %277 = vst.msk [vmem:[%s503_s3 + $0x1c] sm:$0xf] %vm269_vm2, %v330_v52  ;;  %v328_v57 = vpack.c.bf16 %v162_v53, %v162_v53  ;;  %285 = vst.msk [vmem:[%s503_s3 + $0x3c] sm:$0xf] %vm269_vm2, %v338_v55  ;;  %v336_v58 = vpack.c.bf16 %v194_v56, %v194_v56 }
  0xd9   :  { %275 = vst.msk [vmem:[%s503_s3 + $0x14] sm:$0xf] %vm269_vm2, %v328_v57  ;;  %283 = vst.msk [vmem:[%s503_s3 + $0x34] sm:$0xf] %vm269_vm2, %v336_v58 }

</bundles_post_ra>
